<compile_context>
chip_gen: v6e
topology: v6e:2x2x1
jax: 0.10.0
libtpu: 0.0.40
codegen_flags: <defaults>
</compile_context>

<pallas_src>
import numpy as np

import jax
import jax.numpy as jnp
from jax.experimental import pallas as pl
from jax.experimental.pallas import tpu as pltpu


_BLOCK_BUDGET_BYTES = 36 * 1024 * 1024   # VMEM for pipelined blocks (v7x 64 MiB safe)
_VMEM_LIMIT_BYTES = 48 * 1024 * 1024     # explicit scoped-VMEM limit (> v5e 16 MiB default)
_T_MAX = 8192                            # max spatial lanes per grid step
_T_MIN = 512                             # keep >= 512 lanes (~85% of HBM roofline)
_NB_MAX = 8                              # max images batched per grid step


# ----------------------------------------------------------------------------
# Pallas kernels: fused 1x1 conv + BN + ReLU
# ----------------------------------------------------------------------------
def _conv1x1_bn_relu_kernel(x_ref, w_ref, b_ref, o_ref):
    # x_ref: (Nb, Cin, T)   input strip (f32 or bf16), T lane-dense
    # w_ref: (Cout, Cin)    bf16 BN-fused 1x1 conv weights
    # b_ref: (Cout, 1)      f32 BN-fused bias
    # o_ref: (Nb, Cout, T)  output strip
    w = w_ref[...]
    bias = b_ref[...]
    for b in range(x_ref.shape[0]):
        acc = jnp.dot(w, x_ref[b].astype(jnp.bfloat16),
                      preferred_element_type=jnp.float32)
        o_ref[b] = jnp.maximum(acc + bias, 0.0).astype(o_ref.dtype)


def _conv1x1_bn_relu_kernel_ksplit(x_ref, w_ref, b_ref, o_ref, acc_ref):
    # Same as above but the Cin axis is split over grid axis 2 (reduction):
    # acc_ref: (Nb, Cout, T) f32 scratch; init at k==0, bias+ReLU+store at k==last.
    k = pl.program_id(2)

    @pl.when(k == 0)
    def _init():
        acc_ref[...] = jnp.zeros_like(acc_ref)

    w = w_ref[...]
    for b in range(x_ref.shape[0]):
        acc_ref[b] += jnp.dot(w, x_ref[b].astype(jnp.bfloat16),
                              preferred_element_type=jnp.float32)

    @pl.when(k == pl.num_programs(2) - 1)
    def _finish():
        bias = b_ref[...]
        for b in range(o_ref.shape[0]):
            o_ref[b] = jnp.maximum(acc_ref[b] + bias, 0.0).astype(o_ref.dtype)


# ----------------------------------------------------------------------------
# VMEM-budget-aware tile selection
# ----------------------------------------------------------------------------
def _round_up(x, m):
    return ((x + m - 1) // m) * m


def _pick_tiles(n, cin, cout, hw, x_bytes, out_bytes, budget=_BLOCK_BUDGET_BYTES):
    """Choose (Nb, CK, T): images per step, Cin slice, spatial (lane) tile."""

    def fits(nb, ck, t):
        x_blk = 2 * nb * ck * t * x_bytes              # double-buffered input
        o_blk = 2 * nb * cout * t * out_bytes          # double-buffered output
        w_blk = 2 * (cout * ck * 2 + cout * 4)         # bf16 weights + f32 bias
        acc = nb * cout * t * 4 if ck < cin else 0     # f32 scratch when K-split
        tmp = nb * ck * t * 2                          # in-kernel bf16 copy of x
        return x_blk + o_blk + w_blk + acc + tmp <= budget

    # Spatial tile: lane-dense multiple of 128 (full extent when HW < 128 is legal).
    if hw < 128:
        t = hw
    else:
        t = min((hw // 128) * 128, _T_MAX)

    ck = cin
    # Shrink T (not below _T_MIN) while the full-Cin blocks do not fit.
    while t > _T_MIN and not fits(1, ck, t):
        t = max(_T_MIN, ((t // 2) // 128) * 128)
    # Still too big -> split Cin (keeps T large and stores lane-dense).
    if not fits(1, ck, t) and cin % 128 == 0:
        for cand in range(cin - 128, 0, -128):
            if cin % cand == 0 and fits(1, cand, t):
                ck = cand
                break
    # Last resort: shrink T below _T_MIN.
    while t > 128 and not fits(1, ck, t):
        t = max(128, ((t // 2) // 128) * 128)

    # v7x has 2 TensorCores: a batch-1, single-tile launch leaves half the chip
    # idle, so expose >= 2 spatial grid points (each still >= _T_MIN lanes).
    if n == 1 and hw >= 2 * _T_MIN and t >= hw:
        t = _round_up((hw + 1) // 2, 128)

    # Small feature maps: batch several images per grid step to amortize the
    # ~0.35 us per-grid-step overhead, as long as the blocks keep fitting.
    nb = 1
    if n > 1 and t >= hw:
        while nb < min(n, _NB_MAX) and fits(nb * 2, ck, t):
            nb *= 2
        nb = min(nb, n)
    return nb, ck, t


# ----------------------------------------------------------------------------
# Wrapper
# ----------------------------------------------------------------------------
def conv_c3_forward(x_nchw, w_oihw, bn_gamma, bn_beta, bn_mean, bn_var,
                    eps=1e-5, out_dtype=None):
    """Conv_C3 forward: ReLU(BN(Conv2d(c1, c2, k=1, s=1, p=0, bias=False)(x))).

    BN uses inference (running-stats) semantics and is fused into the 1x1 conv.
    NCHW in / NCHW out.  `out_dtype` defaults to x's dtype; pass jnp.bfloat16
    (and bf16 x) to halve HBM traffic on this bandwidth-bound layer.

    TODO(synk): only the Conv_C3 default configuration (k=1, s=1, groups=1) is
    implemented; k>1 would need halo'd spatial tiles.
    """
    N, Cin, H, W = x_nchw.shape
    Cout = w_oihw.shape[0]
    assert w_oihw.shape == (Cout, Cin, 1, 1), "only 1x1 conv (Conv_C3 default) supported"
    out_dtype = x_nchw.dtype if out_dtype is None else out_dtype

    # Fuse BN (running stats) into the conv: 2-D bf16 weight slab + f32 bias column.
    scale = (bn_gamma.astype(jnp.float32) / jnp.sqrt(bn_var.astype(jnp.float32) + eps))
    w2d = (w_oihw[:, :, 0, 0].astype(jnp.float32) * scale[:, None]).astype(jnp.bfloat16)
    bias = (bn_beta.astype(jnp.float32) - bn_mean.astype(jnp.float32) * scale)
    bias = bias.reshape(Cout, 1)

    HW = H * W
    x_flat = x_nchw.reshape(N, Cin, HW)                 # free reshape, stays NCHW
    nb, ck, t = _pick_tiles(N, Cin, Cout, HW,
                            x_nchw.dtype.itemsize, np.dtype(out_dtype).itemsize)
    n_k = Cin // ck
    grid = (pl.cdiv(N, nb), pl.cdiv(HW, t), n_k)        # reduction axis last

    if n_k == 1:
        kernel = _conv1x1_bn_relu_kernel
        scratch = []
    else:
        kernel = _conv1x1_bn_relu_kernel_ksplit
        scratch = [pltpu.VMEM((nb, Cout, t), jnp.float32)]

    out = pl.pallas_call(
        kernel,
        out_shape=jax.ShapeDtypeStruct((N, Cout, HW), out_dtype),
        grid=grid,
        in_specs=[
            pl.BlockSpec((nb, ck, t), lambda n, s, k: (n, k, s)),
            pl.BlockSpec((Cout, ck), lambda n, s, k: (0, k)),
            pl.BlockSpec((Cout, 1), lambda n, s, k: (0, 0)),
        ],
        out_specs=pl.BlockSpec((nb, Cout, t), lambda n, s, k: (n, 0, s)),
        scratch_shapes=scratch,
        compiler_params=pltpu.CompilerParams(
            dimension_semantics=("parallel", "parallel", "arbitrary"),
            vmem_limit_bytes=_VMEM_LIMIT_BYTES),
    )(x_flat, w2d, bias)
    return out.reshape(N, Cout, H, W)


# ----------------------------------------------------------------------------
# Pure-JAX references for correctness validation
# ----------------------------------------------------------------------------
def _ref_conv_c3(x, w_oihw, gamma, beta, mean, var, eps=1e-5):
    y = jax.lax.conv_general_dilated(
        x.astype(jnp.float32), w_oihw, window_strides=(1, 1), padding="VALID",
        dimension_numbers=("NCHW", "OIHW", "NCHW"))
    scale = gamma / jnp.sqrt(var + eps)
    y = y * scale.reshape(1, -1, 1, 1) + (beta - mean * scale).reshape(1, -1, 1, 1)
    return jax.nn.relu(y)


def _ref_conv_c3_bf16_operands(x, w_oihw, gamma, beta, mean, var, eps=1e-5):
    """Same math as the kernel: bf16-rounded matmul operands, f32 accumulate."""
    scale = gamma / jnp.sqrt(var + eps)
    w_fused = (w_oihw[:, :, 0, 0] * scale[:, None]).astype(jnp.bfloat16).astype(jnp.float32)
    x_bf = x.astype(jnp.bfloat16).astype(jnp.float32)
    y = jnp.einsum("oc,nchw->nohw", w_fused, x_bf)
    y = y + (beta - mean * scale).reshape(1, -1, 1, 1)
    return jnp.maximum(y, 0.0)


if __name__ == "__main__":
    key = jax.random.PRNGKey(0)
    kx, kw, kg, kb, km, kv = jax.random.split(key, 6)

    # Conv_C3(c1=4, c2=8) defaults (k=1, s=1, ReLU); input (N, C, H, W) = (2, 4, 16, 16).
    N, C1, C2, H, W = 2, 4, 8, 16, 16
    x = jax.random.normal(kx, (N, C1, H, W), jnp.float32)
    w = jax.random.normal(kw, (C2, C1, 1, 1), jnp.float32) * 0.3
    gamma = jax.random.uniform(kg, (C2,), jnp.float32, 0.5, 1.5)
    beta = jax.random.normal(kb, (C2,), jnp.float32) * 0.1
    mean = jax.random.normal(km, (C2,), jnp.float32) * 0.1
    var = jax.random.uniform(kv, (C2,), jnp.float32, 0.5, 1.5)

    # f32 in / f32 out.
    out = jax.block_until_ready(conv_c3_forward(x, w, gamma, beta, mean, var))
    assert out.shape == (N, C2, H, W)
    ref_bf = _ref_conv_c3_bf16_operands(x, w, gamma, beta, mean, var)
    assert jnp.allclose(out, ref_bf, atol=1e-4, rtol=1e-4), \
        float(jnp.max(jnp.abs(out - ref_bf)))
    ref_f32 = _ref_conv_c3(x, w, gamma, beta, mean, var)
    assert jnp.allclose(out, ref_f32, atol=0.25, rtol=0.05), \
        float(jnp.max(jnp.abs(out - ref_f32)))

    # Odd spatial size -> exercises the ragged (pl.cdiv) spatial tiling path.
    x2 = jax.random.normal(kx, (2, C1, 20, 20), jnp.float32)
    out2 = jax.block_until_ready(conv_c3_forward(x2, w, gamma, beta, mean, var))
    assert out2.shape == (2, C2, 20, 20)
    ref2 = _ref_conv_c3_bf16_operands(x2, w, gamma, beta, mean, var)
    assert jnp.allclose(out2, ref2, atol=1e-4, rtol=1e-4), \
        float(jnp.max(jnp.abs(out2 - ref2)))

    # bf16 activations in / bf16 out (HBM-byte-reduction path).
    out_bf = jax.block_until_ready(
        conv_c3_forward(x.astype(jnp.bfloat16), w, gamma, beta, mean, var,
                        out_dtype=jnp.bfloat16))
    assert out_bf.dtype == jnp.bfloat16 and out_bf.shape == (N, C2, H, W)
    assert jnp.allclose(out_bf.astype(jnp.float32), ref_f32, atol=0.25, rtol=0.05), \
        float(jnp.max(jnp.abs(out_bf.astype(jnp.float32) - ref_f32)))

    print("KERNEL_OK")
</pallas_src>

<mosaic_0001>
module attributes {stable_mosaic.version = 11 : i64} {
  func.func @_conv1x1_bn_relu_kernel(%arg0: i32, %arg1: i32, %arg2: i32, %arg3: memref<2x4x256xf32, #tpu.memory_space<vmem>>, %arg4: memref<8x4xbf16, #tpu.memory_space<vmem>>, %arg5: memref<8x1xf32, #tpu.memory_space<vmem>>, %arg6: memref<2x8x256xf32, #tpu.memory_space<vmem>>) attributes {dimension_semantics = [#tpu.dimension_semantics<parallel>, #tpu.dimension_semantics<parallel>, #tpu.dimension_semantics<arbitrary>], iteration_bounds = array<i64: 1, 1, 1>, scalar_prefetch = 0 : i64, scratch_operands = 0 : i64, tpu.core_type = #tpu.core_type<tc>, window_params = [{transform_indices = @transform_0, window_bounds = array<i64: 2, 4, 256>}, {transform_indices = @transform_1, window_bounds = array<i64: 8, 4>}, {pipeline_mode = #tpu.pipeline_mode<synchronous>, transform_indices = @transform_2, window_bounds = array<i64: 8, 1>}, {transform_indices = @transform_3, window_bounds = array<i64: 2, 8, 256>}]} {
    %c0 = arith.constant 0 : index
    %c0_0 = arith.constant 0 : index
    %0 = vector.load %arg4[%c0, %c0_0] : memref<8x4xbf16, #tpu.memory_space<vmem>>, vector<8x4xbf16>
    %c0_1 = arith.constant 0 : index
    %c0_2 = arith.constant 0 : index
    %1 = vector.load %arg5[%c0_1, %c0_2] : memref<8x1xf32, #tpu.memory_space<vmem>>, vector<8x1xf32>
    %c0_3 = arith.constant 0 : index
    %c0_4 = arith.constant 0 : index
    %c0_5 = arith.constant 0 : index
    %2 = vector.load %arg3[%c0_3, %c0_4, %c0_5] : memref<2x4x256xf32, #tpu.memory_space<vmem>>, vector<1x4x256xf32>
    %3 = vector.shape_cast %2 : vector<1x4x256xf32> to vector<4x256xf32>
    %4 = arith.truncf %3 : vector<4x256xf32> to vector<4x256xbf16>
    %cst = arith.constant dense<0.000000e+00> : vector<8x256xf32>
    %5 = tpu.matmul %0, %4, %cst {dimension_numbers = #tpu.dot_dimension_numbers<[1], [0], [0], [1], [0, 0, 1, 1], [], []>} : vector<8x4xbf16>, vector<4x256xbf16>, vector<8x256xf32> -> vector<8x256xf32>
    %6 = vector.broadcast %1 : vector<8x1xf32> to vector<8x256xf32>
    %7 = arith.addf %5, %6 : vector<8x256xf32>
    %cst_6 = arith.constant 0.000000e+00 : f32
    %8 = vector.broadcast %cst_6 : f32 to vector<8x256xf32>
    %9 = arith.maximumf %7, %8 : vector<8x256xf32>
    %c0_7 = arith.constant 0 : index
    %c0_8 = arith.constant 0 : index
    %c0_9 = arith.constant 0 : index
    %10 = vector.load %arg6[%c0_7, %c0_8, %c0_9] : memref<2x8x256xf32, #tpu.memory_space<vmem>>, vector<1x8x256xf32>
    %11 = vector.shape_cast %10 : vector<1x8x256xf32> to vector<8x256xf32>
    %12 = vector.shape_cast %9 : vector<8x256xf32> to vector<1x8x256xf32>
    tpu.vector_store %arg6[%c0_7, %c0_8, %c0_9], %12 {strides = array<i32>} : memref<2x8x256xf32, #tpu.memory_space<vmem>>, vector<1x8x256xf32>,
    %c1 = arith.constant 1 : index
    %c0_10 = arith.constant 0 : index
    %c0_11 = arith.constant 0 : index
    %13 = vector.load %arg3[%c1, %c0_10, %c0_11] : memref<2x4x256xf32, #tpu.memory_space<vmem>>, vector<1x4x256xf32>
    %14 = vector.shape_cast %13 : vector<1x4x256xf32> to vector<4x256xf32>
    %15 = arith.truncf %14 : vector<4x256xf32> to vector<4x256xbf16>
    %cst_12 = arith.constant dense<0.000000e+00> : vector<8x256xf32>
    %16 = tpu.matmul %0, %15, %cst_12 {dimension_numbers = #tpu.dot_dimension_numbers<[1], [0], [0], [1], [0, 0, 1, 1], [], []>} : vector<8x4xbf16>, vector<4x256xbf16>, vector<8x256xf32> -> vector<8x256xf32>
    %17 = vector.broadcast %1 : vector<8x1xf32> to vector<8x256xf32>
    %18 = arith.addf %16, %17 : vector<8x256xf32>
    %cst_13 = arith.constant 0.000000e+00 : f32
    %19 = vector.broadcast %cst_13 : f32 to vector<8x256xf32>
    %20 = arith.maximumf %18, %19 : vector<8x256xf32>
    %c1_14 = arith.constant 1 : index
    %c0_15 = arith.constant 0 : index
    %c0_16 = arith.constant 0 : index
    %21 = vector.load %arg6[%c1_14, %c0_15, %c0_16] : memref<2x8x256xf32, #tpu.memory_space<vmem>>, vector<1x8x256xf32>
    %22 = vector.shape_cast %21 : vector<1x8x256xf32> to vector<8x256xf32>
    %23 = vector.shape_cast %20 : vector<8x256xf32> to vector<1x8x256xf32>
    tpu.vector_store %arg6[%c1_14, %c0_15, %c0_16], %23 {strides = array<i32>} : memref<2x8x256xf32, #tpu.memory_space<vmem>>, vector<1x8x256xf32>,
    return
  }
  func.func @transform_0(%arg0: i32, %arg1: i32, %arg2: i32) -> (i32, i32, i32) {
    %c0_i32 = arith.constant 0 : i32
    return %arg0, %arg2, %arg1 : i32, i32, i32
  }
  func.func @transform_1(%arg0: i32, %arg1: i32, %arg2: i32) -> (i32, i32) {
    %c0_i32 = arith.constant 0 : i32
    %c0_i32_0 = arith.constant 0 : i32
    return %c0_i32, %arg2 : i32, i32
  }
  func.func @transform_2(%arg0: i32, %arg1: i32, %arg2: i32) -> (i32, i32) {
    %c0_i32 = arith.constant 0 : i32
    %c0_i32_0 = arith.constant 0 : i32
    %c0_i32_1 = arith.constant 0 : i32
    return %c0_i32, %c0_i32_0 : i32, i32
  }
  func.func @transform_3(%arg0: i32, %arg1: i32, %arg2: i32) -> (i32, i32, i32) {
    %c0_i32 = arith.constant 0 : i32
    %c0_i32_0 = arith.constant 0 : i32
    return %arg0, %c0_i32, %arg1 : i32, i32, i32
  }
}

</mosaic_0001>

<bundles_post_ra>
// kernel: tpu_custom_call.1
= control target key start
LH: loop header
LB: loop body
LE: loop exit
PB: predicated region body
PF: predicated region fallthrough
CT: control target
= control target key end

     0   :  { %8 = vsyncpa [#allocation3], 0  ;;  %s272_s0 = inlined_call_operand.hbm [shape: f32[2,4,256], index: 0, kind: input, shape index: {}]   ;;  %s273_s1 = inlined_call_operand.vmem [shape: bf16[8,4], index: 1, kind: input, shape index: {}]   ;;  %s274_s2 = inlined_call_operand.vmem [shape: f32[8,1], index: 2, kind: input, shape index: {}]   ;;  %s275_s3 = inlined_call_operand.hbm [shape: f32[2,8,256], index: 3, kind: output, shape index: {}]  }
   0x1   :  { %9 = vsyncpa [#allocation4], 0  ;;  %s233_s12 = smov [#allocation2]  }
   0x2   :  { %s15_s13 = sshll.u32 %s233_s12, 4  ;;  %s16_s13 = int_to_ptr.vmem [resolvable:$true] %s15_s13 }
   0x3   :  { %s197_s14 = scalar_lea.vmem %s16_s13, 256  ;;  %p202_p1 = scmp.lt.s32.totalorder %s16_s13, %s16_s13 }
   0x4   :  { %p198_p0 = scmp.ne.s32.totalorder %s16_s13, %s197_s14  ;;  %p203_p2 = scmp.lt.s32.totalorder %s197_s14, %s197_s14 }
   0x6   :  { %p204_p3 = por %p203_p2, %p202_p1 }
   0x8   :  { %p205_p4 = pnand %p204_p3, %p198_p0 }
   0xa   :  { %208 = shalt.err (!%p205_p4)
}
   0xb   :  { %s234_s15 = smov 128   ;;  %s235_s16 = smov 8  }
   0xc   :  { %21 = dma.hbm_to_vmem [thread:$0]  %s272_s0, 256, %s16_s13, [#allocation3], %s234_s15, %s234_s15, %s235_s16  }
   0xd   :  { %229 = dma.done.wait [#allocation3], 256  }
   0xe   :  { %230 = vsyncadd [#allocation3], 4294967040  ;;  %v236_v0 = vmov 0   ;;  %v32_v1 = vld [vmem:[#allocation2] sm:$0xff]  ;;  %vm47_vm0 = vcmask 1041408   ;;  %v100_v2 = vld [vmem:[#allocation2 + $0x8] sm:$0xff] }
   0xf   :  { %86 = vmatprep.mubr.bf16.mxu0 %v236_v0  ;;  %144 = vmatprep.mubr.bf16.mxu1 %v236_v0  ;;  %v34_v3 = vcombine.high %v32_v1, %v32_v1  ;;  %v102_v4 = vcombine.high %v100_v2, %v100_v2  ;;  %v36_v5 = vpack.c.bf16 %v32_v1, %v32_v1  ;;  %v31_v7 = vld [vmem:[%s274_s2] sm:$0xff]  ;;  %vm43_vm1 = vcmask 31744   ;;  %s237_s2 = smov [#allocation5]  }
  0x10   :  { %186 = vset.pattern.permute.xlu0 %v236_v0  ;;  %v104_v6 = vpack.c.bf16 %v100_v2, %v100_v2  ;;  %v30_v12 = vld [vmem:[%s273_s1] sm:$0xf]  ;;  %s163_s22 = sshll.u32 %s237_s2, 4  ;;  %s164_s22 = int_to_ptr.vmem [resolvable:$true] %s163_s22 }
  0x11   :  { %40 = vperm.xlu0 %186, %v31_v7   ;;  %v37_v8 = vpack.c.bf16 %v34_v3, %v34_v3  ;;  %v105_v9 = vpack.c.bf16 %v102_v4, %v102_v4  ;;  %v49_v10 = vsel %vm47_vm0, %v36_v5, 0  ;;  %s209_s1 = scalar_lea.vmem %s164_s22, 512  ;;  %p214_p6 = scmp.lt.s32.totalorder %s164_s22, %s164_s22 }
  0x12   :  { %v107_v11 = vsel %vm47_vm0, %v104_v6, 0  ;;  %p210_p5 = scmp.ne.s32.totalorder %s164_s22, %s209_s1  ;;  %p215_p7 = scmp.lt.s32.totalorder %s209_s1, %s209_s1 }
  0x13   :  { %175 = vmatprep.subr.msk.bf16.mxu0 %vm47_vm0, %v37_v8  ;;  %177 = vmatprep.subr.msk.bf16.mxu1 %vm47_vm0, %v105_v9 }
  0x14   :  { %69 = vmatpush1.bf16.msra.mxu0 %v49_v10  ;;  %127 = vmatpush1.bf16.msra.mxu1 %v107_v11  ;;  %p216_p8 = por %p215_p7, %p214_p6 }
  0x16   :  { %p217_p9 = pnand %p216_p8, %p210_p5 }
  0x17   :  { %176 = vmatmul.mubr.msk.bf16.vlgmr.msra.gmra.mxu0 %vm43_vm1, %v30_v12  ;;  %178 = vmatmul.mubr.msk.bf16.vlgmr.msra.gmra.mxu1 %vm43_vm1, %v30_v12 }
  0x8c   :  { %v41_v13 = vpop.permute.xlu0 %40 }
  0xd7   :  { %v88_v14 = vpop.f32.mrf.mxu0  ;;  %v146_v15 = vpop.f32.mrf.mxu1 }
  0xd8   :  { %v89_v16 = vadd.f32 %v88_v14, %v41_v13  ;;  %v147_v17 = vadd.f32 %v146_v15, %v41_v13 }
  0xd9   :  { %v90_v18 = vpop.f32.mrf.mxu0  ;;  %v148_v19 = vpop.f32.mrf.mxu1 }
  0xda   :  { %v95_v20 = vmax.f32 %v89_v16, 0.0  ;;  %v153_v21 = vmax.f32 %v147_v17, 0.0  ;;  %v91_v22 = vadd.f32 %v90_v18, %v41_v13  ;;  %v149_v23 = vadd.f32 %v148_v19, %v41_v13 }
  0xdb   :  { %v92_v24 = vpop.f32.mrf.mxu0  ;;  %v150_v25 = vpop.f32.mrf.mxu1 }
  0xdc   :  { %97 = vst [vmem:[#allocation5] sm:$0xff] %v95_v20  ;;  %156 = vst [vmem:[#allocation5 + $0x10] sm:$0xff] %v153_v21  ;;  %v96_v26 = vmax.f32 %v91_v22, 0.0  ;;  %v154_v27 = vmax.f32 %v149_v23, 0.0 }
  0xdd   :  { %v93_v28 = vpop.f32.mrf.mxu0  ;;  %v151_v29 = vpop.f32.mrf.mxu1 }
  0xde   :  { %98 = vst [vmem:[#allocation5 + $0x8] sm:$0xff] %v96_v26  ;;  %157 = vst [vmem:[#allocation5 + $0x18] sm:$0xff] %v154_v27 }
  0xdf   :  { %220 = shalt.err (!%p217_p9)
}
  0xe0   :  { %s238_s23 = smov 256   ;;  %s239_s24 = smov 16  }
  0xe1   :  { %169 = dma.vmem_to_hbm [thread:$0]  %s164_s22, 512, %s275_s3, [#allocation4], %s238_s23, %s238_s23, %s239_s24  }
  0xe2   :  { %231 = dma.done.wait [#allocation4], 512  }
  0xe3   :  { %232 = vsyncadd [#allocation4], 4294966784 }
  0xe4   :  { %173 = vsyncpa [#allocation3], 1 }
  0xe5   :  { %174 = vsyncpa [#allocation4], 1 }

</bundles_post_ra>
